<compile_context>
chip_gen: v6e
topology: v6e:2x2x1
jax: 0.10.0
libtpu: 0.0.40
codegen_flags: <defaults>
</compile_context>

<pallas_src>
import functools

import jax
import jax.numpy as jnp
from jax.experimental import pallas as pl
from jax.experimental.pallas import tpu as pltpu

BN_EPS = 1e-5


def _convblock_kernel(p_ref, w_ref, g_ref, b_ref, o_ref,
                      sum_ref, sq_ref, scale_ref, shift_ref, *, n_rows):
    # p_ref:  (K, TM)     im2col patches tile (K = KH*KW*Cin, TM rows of N*Ho*Wo)
    # w_ref:  (Cout, K)   reshaped conv weights
    # g_ref, b_ref: (Cout, 1) BN gamma / beta
    # o_ref:  (Cout, TM)  output tile (lane-dense: TM is a multiple of 128)
    # scratch: per-channel f32 accumulators / folded affine, all (Cout, 1)
    pss = pl.program_id(0)          # 0 = stats pass, 1 = normalize + Mish pass
    t = pl.program_id(1)            # row tile index
    nt = pl.num_programs(1)

    # Conv tile on the MXU. Conv bias omitted: it cancels under batch-stat BN.
    y = jnp.dot(w_ref[...], p_ref[...], preferred_element_type=jnp.float32)

    @pl.when(pss == 0)
    def _stats_pass():
        @pl.when(t == 0)
        def _init():
            sum_ref[...] = jnp.zeros_like(sum_ref)
            sq_ref[...] = jnp.zeros_like(sq_ref)

        sum_ref[...] += jnp.sum(y, axis=1, keepdims=True)
        sq_ref[...] += jnp.sum(y * y, axis=1, keepdims=True)
        # Keep the pass-0 writeback deterministic (fully overwritten in pass 1).
        o_ref[...] = y.astype(o_ref.dtype)

        @pl.when(t == nt - 1)
        def _finalize():
            inv_n = 1.0 / float(n_rows)
            mean = sum_ref[...] * inv_n
            var = jnp.maximum(sq_ref[...] * inv_n - mean * mean, 0.0)
            rstd = jax.lax.rsqrt(var + BN_EPS)
            scale = g_ref[...] * rstd
            scale_ref[...] = scale
            shift_ref[...] = b_ref[...] - mean * scale

    @pl.when(pss == 1)
    def _apply_pass():
        z = scale_ref[...] * y + shift_ref[...]
        # Mish(z) = z * tanh(softplus(z));  tanh(softplus(z)) = u/(u+2),
        # u = e*(e+2), e = exp(z).  Clamp keeps e**2 finite; for z >= 20 the
        # factor is 1.0 at f32 precision anyway.
        e = jnp.exp(jnp.minimum(z, 20.0))
        u = e * (e + 2.0)
        o_ref[...] = (z * (u / (u + 2.0))).astype(o_ref.dtype)


def conv_block_pallas(x_nchw, weight, bias, gamma, beta, *, stride, padding,
                      block_r=512):
    """x_nchw: (N, Cin, H, W); weight: (Cout, Cin, KH, KW); bias/gamma/beta: (Cout,).

    `bias` is accepted to mirror the PyTorch module but is not used: with
    training-mode BatchNorm the conv bias cancels exactly.
    """
    del bias
    N, Cin, H, W = x_nchw.shape
    Cout, _, KH, KW = weight.shape
    s, p = stride, padding
    Ho = (H + 2 * p - KH) // s + 1
    Wo = (W + 2 * p - KW) // s + 1
    R = N * Ho * Wo
    K = KH * KW * Cin

    assert block_r % 128 == 0, "row tile must be a multiple of 128 lanes"
    tm = block_r
    T = pl.cdiv(R, tm)
    R_pad = T * tm

    # ---- glue: NCHW -> NHWC, pad, im2col, transpose to (K, R_pad) ----
    x = jnp.transpose(x_nchw, (0, 2, 3, 1)).astype(jnp.float32)   # (N, H, W, Cin)
    x_pad = jnp.pad(x, ((0, 0), (p, p), (p, p), (0, 0)))
    cols = []
    for kh in range(KH):
        for kw in range(KW):
            cols.append(x_pad[:, kh:kh + Ho * s:s, kw:kw + Wo * s:s, :])  # (N,Ho,Wo,Cin)
    patches = jnp.stack(cols, axis=3).reshape(R, K)               # (R, K), K-order (kh,kw,cin)
    # Zero rows contribute nothing to the BN sums (no conv bias), so padding
    # R with zeros keeps the batch statistics exact.
    patches = jnp.pad(patches, ((0, R_pad - R), (0, 0)))
    patches_t = patches.T                                         # (K, R_pad)

    # weight (Cout,Cin,KH,KW) -> (Cout,KH,KW,Cin) -> (Cout, K)
    w_t = jnp.transpose(weight, (0, 2, 3, 1)).reshape(Cout, K).astype(jnp.float32)
    g_col = gamma.reshape(Cout, 1).astype(jnp.float32)
    b_col = beta.reshape(Cout, 1).astype(jnp.float32)

    kernel = functools.partial(_convblock_kernel, n_rows=R)
    out_t = pl.pallas_call(
        kernel,
        out_shape=jax.ShapeDtypeStruct((Cout, R_pad), jnp.float32),
        grid=(2, T),
        in_specs=[
            pl.BlockSpec((K, tm), lambda pss, t: (0, t)),      # patches tile
            pl.BlockSpec((Cout, K), lambda pss, t: (0, 0)),    # weights (resident)
            pl.BlockSpec((Cout, 1), lambda pss, t: (0, 0)),    # gamma
            pl.BlockSpec((Cout, 1), lambda pss, t: (0, 0)),    # beta
        ],
        out_specs=pl.BlockSpec((Cout, tm), lambda pss, t: (0, t)),
        scratch_shapes=[
            pltpu.VMEM((Cout, 1), jnp.float32),   # running sum
            pltpu.VMEM((Cout, 1), jnp.float32),   # running sum of squares
            pltpu.VMEM((Cout, 1), jnp.float32),   # folded scale  = gamma * rstd
            pltpu.VMEM((Cout, 1), jnp.float32),   # folded shift  = beta - mean*scale
        ],
        compiler_params=pltpu.CompilerParams(
            dimension_semantics=("arbitrary", "arbitrary"),
            vmem_limit_bytes=32 * 1024 * 1024,
        ),
    )(patches_t, w_t, g_col, b_col)

    # (Cout, R_pad) -> (Cout, R) -> (Cout, N, Ho, Wo) -> NCHW
    out = out_t[:, :R].reshape(Cout, N, Ho, Wo)
    return jnp.transpose(out, (1, 0, 2, 3))


def conv_block_reference(x_nchw, weight, bias, gamma, beta, *, stride, padding):
    """Pure-JAX reference mirroring PyTorch semantics (training-mode BN, with bias)."""
    y = jax.lax.conv_general_dilated(
        x_nchw.astype(jnp.float32), weight.astype(jnp.float32),
        window_strides=(stride, stride),
        padding=((padding, padding), (padding, padding)),
        dimension_numbers=("NCHW", "OIHW", "NCHW"))
    y = y + bias.reshape(1, -1, 1, 1)
    mean = jnp.mean(y, axis=(0, 2, 3), keepdims=True)
    var = jnp.mean((y - mean) ** 2, axis=(0, 2, 3), keepdims=True)
    z = gamma.reshape(1, -1, 1, 1) * (y - mean) * jax.lax.rsqrt(var + BN_EPS) \
        + beta.reshape(1, -1, 1, 1)
    return z * jnp.tanh(jax.nn.softplus(z))


if __name__ == "__main__":
    # Shapes consistent with ConvBlock(4, 8, kernel_size=3, stride=1, padding=1)
    N, Cin, H, W = 2, 4, 16, 16
    Cout, KH, KW = 8, 3, 3
    stride, padding = 1, 1

    key = jax.random.PRNGKey(0)
    kx, kw_, kb, kg, kbt = jax.random.split(key, 5)
    x = jax.random.normal(kx, (N, Cin, H, W), dtype=jnp.float32)
    weight = jax.random.normal(kw_, (Cout, Cin, KH, KW), dtype=jnp.float32) * 0.1
    bias = jax.random.normal(kb, (Cout,), dtype=jnp.float32) * 0.1
    gamma = 1.0 + 0.1 * jax.random.normal(kg, (Cout,), dtype=jnp.float32)
    beta = 0.1 * jax.random.normal(kbt, (Cout,), dtype=jnp.float32)

    # block_r=384 -> R=512 rows are padded to 768 and processed in 2 tiles,
    # exercising both the multi-tile stats accumulation and the zero-row padding.
    out = conv_block_pallas(x, weight, bias, gamma, beta,
                            stride=stride, padding=padding, block_r=384)
    out = jax.block_until_ready(out)

    ref = conv_block_reference(x, weight, bias, gamma, beta,
                               stride=stride, padding=padding)
    assert out.shape == (N, Cout, H, W), out.shape
    max_err = float(jnp.max(jnp.abs(out - ref)))
    assert jnp.allclose(out, ref, atol=2e-4, rtol=2e-4), max_err
    print("KERNEL_OK")
</pallas_src>

<mosaic_0001>
module attributes {stable_mosaic.version = 11 : i64} {
  func.func @_convblock_kernel(%arg0: i32, %arg1: i32, %arg2: memref<36x384xf32, #tpu.memory_space<vmem>>, %arg3: memref<8x36xf32, #tpu.memory_space<vmem>>, %arg4: memref<8x1xf32, #tpu.memory_space<vmem>>, %arg5: memref<8x1xf32, #tpu.memory_space<vmem>>, %arg6: memref<8x384xf32, #tpu.memory_space<vmem>>, %arg7: memref<8x1xf32, #tpu.memory_space<vmem>>, %arg8: memref<8x1xf32, #tpu.memory_space<vmem>>, %arg9: memref<8x1xf32, #tpu.memory_space<vmem>>, %arg10: memref<8x1xf32, #tpu.memory_space<vmem>>) attributes {dimension_semantics = [#tpu.dimension_semantics<arbitrary>, #tpu.dimension_semantics<arbitrary>], iteration_bounds = array<i64: 2, 2>, scalar_prefetch = 0 : i64, scratch_operands = 4 : i64, tpu.core_type = #tpu.core_type<tc>, window_params = [{transform_indices = @transform_0, window_bounds = array<i64: 36, 384>}, {pipeline_mode = #tpu.pipeline_mode<synchronous>, transform_indices = @transform_1, window_bounds = array<i64: 8, 36>}, {pipeline_mode = #tpu.pipeline_mode<synchronous>, transform_indices = @transform_2, window_bounds = array<i64: 8, 1>}, {pipeline_mode = #tpu.pipeline_mode<synchronous>, transform_indices = @transform_3, window_bounds = array<i64: 8, 1>}, {transform_indices = @transform_4, window_bounds = array<i64: 8, 384>}]} {
    %c0 = arith.constant 0 : index
    %c0_0 = arith.constant 0 : index
    %0 = vector.load %arg3[%c0, %c0_0] : memref<8x36xf32, #tpu.memory_space<vmem>>, vector<8x36xf32>
    %c0_1 = arith.constant 0 : index
    %c0_2 = arith.constant 0 : index
    %1 = vector.load %arg2[%c0_1, %c0_2] : memref<36x384xf32, #tpu.memory_space<vmem>>, vector<36x384xf32>
    %cst = arith.constant dense<0.000000e+00> : vector<8x384xf32>
    %2 = tpu.matmul %0, %1, %cst {dimension_numbers = #tpu.dot_dimension_numbers<[1], [0], [0], [1], [0, 0, 1, 1], [], []>} : vector<8x36xf32>, vector<36x384xf32>, vector<8x384xf32> -> vector<8x384xf32>
    %c0_i32 = arith.constant 0 : i32
    %3 = arith.cmpi eq, %arg0, %c0_i32 : i32
    %4 = arith.extui %3 : i1 to i32
    %c0_i32_3 = arith.constant 0 : i32
    %5 = arith.cmpi ne, %4, %c0_i32_3 : i32
    scf.if %5 {
      %c0_i32_5 = arith.constant 0 : i32
      %9 = arith.cmpi eq, %arg1, %c0_i32_5 : i32
      %10 = arith.extui %9 : i1 to i32
      %c0_i32_6 = arith.constant 0 : i32
      %11 = arith.cmpi ne, %10, %c0_i32_6 : i32
      scf.if %11 {
        %cst_21 = arith.constant 0.000000e+00 : f32
        %27 = vector.broadcast %cst_21 : f32 to vector<8x1xf32>
        %c0_22 = arith.constant 0 : index
        %c0_23 = arith.constant 0 : index
        %28 = vector.load %arg7[%c0_22, %c0_23] : memref<8x1xf32, #tpu.memory_space<vmem>>, vector<8x1xf32>
        tpu.vector_store %arg7[%c0_22, %c0_23], %27 {strides = array<i32>} : memref<8x1xf32, #tpu.memory_space<vmem>>, vector<8x1xf32>,
        %cst_24 = arith.constant 0.000000e+00 : f32
        %29 = vector.broadcast %cst_24 : f32 to vector<8x1xf32>
        %c0_25 = arith.constant 0 : index
        %c0_26 = arith.constant 0 : index
        %30 = vector.load %arg8[%c0_25, %c0_26] : memref<8x1xf32, #tpu.memory_space<vmem>>, vector<8x1xf32>
        tpu.vector_store %arg8[%c0_25, %c0_26], %29 {strides = array<i32>} : memref<8x1xf32, #tpu.memory_space<vmem>>, vector<8x1xf32>,
      } else {
      }
      %c0_7 = arith.constant 0 : index
      %c0_8 = arith.constant 0 : index
      %12 = vector.load %arg7[%c0_7, %c0_8] : memref<8x1xf32, #tpu.memory_space<vmem>>, vector<8x1xf32>
      %cst_9 = arith.constant dense<0.000000e+00> : vector<8xf32>
      %13 = vector.multi_reduction <add>, %2, %cst_9 [1] : vector<8x384xf32> to vector<8xf32>
      %14 = vector.shape_cast %13 : vector<8xf32> to vector<8x1xf32>
      %15 = arith.addf %12, %14 : vector<8x1xf32>
      %c0_10 = arith.constant 0 : index
      %c0_11 = arith.constant 0 : index
      %16 = vector.load %arg7[%c0_10, %c0_11] : memref<8x1xf32, #tpu.memory_space<vmem>>, vector<8x1xf32>
      tpu.vector_store %arg7[%c0_10, %c0_11], %15 {strides = array<i32>} : memref<8x1xf32, #tpu.memory_space<vmem>>, vector<8x1xf32>,
      %c0_12 = arith.constant 0 : index
      %c0_13 = arith.constant 0 : index
      %17 = vector.load %arg8[%c0_12, %c0_13] : memref<8x1xf32, #tpu.memory_space<vmem>>, vector<8x1xf32>
      %18 = arith.mulf %2, %2 : vector<8x384xf32>
      %cst_14 = arith.constant dense<0.000000e+00> : vector<8xf32>
      %19 = vector.multi_reduction <add>, %18, %cst_14 [1] : vector<8x384xf32> to vector<8xf32>
      %20 = vector.shape_cast %19 : vector<8xf32> to vector<8x1xf32>
      %21 = arith.addf %17, %20 : vector<8x1xf32>
      %c0_15 = arith.constant 0 : index
      %c0_16 = arith.constant 0 : index
      %22 = vector.load %arg8[%c0_15, %c0_16] : memref<8x1xf32, #tpu.memory_space<vmem>>, vector<8x1xf32>
      tpu.vector_store %arg8[%c0_15, %c0_16], %21 {strides = array<i32>} : memref<8x1xf32, #tpu.memory_space<vmem>>, vector<8x1xf32>,
      %c0_17 = arith.constant 0 : index
      %c0_18 = arith.constant 0 : index
      %23 = vector.load %arg6[%c0_17, %c0_18] : memref<8x384xf32, #tpu.memory_space<vmem>>, vector<8x384xf32>
      tpu.vector_store %arg6[%c0_17, %c0_18], %2 {strides = array<i32>} : memref<8x384xf32, #tpu.memory_space<vmem>>, vector<8x384xf32>,
      %c1_i32_19 = arith.constant 1 : i32
      %24 = arith.cmpi eq, %arg1, %c1_i32_19 : i32
      %25 = arith.extui %24 : i1 to i32
      %c0_i32_20 = arith.constant 0 : i32
      %26 = arith.cmpi ne, %25, %c0_i32_20 : i32
      scf.if %26 {
        %c0_21 = arith.constant 0 : index
        %c0_22 = arith.constant 0 : index
        %27 = vector.load %arg7[%c0_21, %c0_22] : memref<8x1xf32, #tpu.memory_space<vmem>>, vector<8x1xf32>
        %cst_23 = arith.constant 0.001953125 : f32
        %28 = vector.broadcast %cst_23 : f32 to vector<8x1xf32>
        %29 = arith.mulf %27, %28 : vector<8x1xf32>
        %c0_24 = arith.constant 0 : index
        %c0_25 = arith.constant 0 : index
        %30 = vector.load %arg8[%c0_24, %c0_25] : memref<8x1xf32, #tpu.memory_space<vmem>>, vector<8x1xf32>
        %cst_26 = arith.constant 0.001953125 : f32
        %31 = vector.broadcast %cst_26 : f32 to vector<8x1xf32>
        %32 = arith.mulf %30, %31 : vector<8x1xf32>
        %33 = arith.mulf %29, %29 : vector<8x1xf32>
        %34 = arith.subf %32, %33 : vector<8x1xf32>
        %cst_27 = arith.constant 0.000000e+00 : f32
        %35 = vector.broadcast %cst_27 : f32 to vector<8x1xf32>
        %36 = arith.maximumf %34, %35 : vector<8x1xf32>
        %cst_28 = arith.constant 9.99999974E-6 : f32
        %37 = vector.broadcast %cst_28 : f32 to vector<8x1xf32>
        %38 = arith.addf %36, %37 : vector<8x1xf32>
        %39 = math.rsqrt %38 : vector<8x1xf32>
        %c0_29 = arith.constant 0 : index
        %c0_30 = arith.constant 0 : index
        %40 = vector.load %arg4[%c0_29, %c0_30] : memref<8x1xf32, #tpu.memory_space<vmem>>, vector<8x1xf32>
        %41 = arith.mulf %40, %39 : vector<8x1xf32>
        %c0_31 = arith.constant 0 : index
        %c0_32 = arith.constant 0 : index
        %42 = vector.load %arg9[%c0_31, %c0_32] : memref<8x1xf32, #tpu.memory_space<vmem>>, vector<8x1xf32>
        tpu.vector_store %arg9[%c0_31, %c0_32], %41 {strides = array<i32>} : memref<8x1xf32, #tpu.memory_space<vmem>>, vector<8x1xf32>,
        %c0_33 = arith.constant 0 : index
        %c0_34 = arith.constant 0 : index
        %43 = vector.load %arg5[%c0_33, %c0_34] : memref<8x1xf32, #tpu.memory_space<vmem>>, vector<8x1xf32>
        %44 = arith.mulf %29, %41 : vector<8x1xf32>
        %45 = arith.subf %43, %44 : vector<8x1xf32>
        %c0_35 = arith.constant 0 : index
        %c0_36 = arith.constant 0 : index
        %46 = vector.load %arg10[%c0_35, %c0_36] : memref<8x1xf32, #tpu.memory_space<vmem>>, vector<8x1xf32>
        tpu.vector_store %arg10[%c0_35, %c0_36], %45 {strides = array<i32>} : memref<8x1xf32, #tpu.memory_space<vmem>>, vector<8x1xf32>,
      } else {
      }
    } else {
    }
    %c1_i32 = arith.constant 1 : i32
    %6 = arith.cmpi eq, %arg0, %c1_i32 : i32
    %7 = arith.extui %6 : i1 to i32
    %c0_i32_4 = arith.constant 0 : i32
    %8 = arith.cmpi ne, %7, %c0_i32_4 : i32
    scf.if %8 {
      %c0_5 = arith.constant 0 : index
      %c0_6 = arith.constant 0 : index
      %9 = vector.load %arg9[%c0_5, %c0_6] : memref<8x1xf32, #tpu.memory_space<vmem>>, vector<8x1xf32>
      %10 = vector.broadcast %9 : vector<8x1xf32> to vector<8x384xf32>
      %11 = arith.mulf %10, %2 : vector<8x384xf32>
      %c0_7 = arith.constant 0 : index
      %c0_8 = arith.constant 0 : index
      %12 = vector.load %arg10[%c0_7, %c0_8] : memref<8x1xf32, #tpu.memory_space<vmem>>, vector<8x1xf32>
      %13 = vector.broadcast %12 : vector<8x1xf32> to vector<8x384xf32>
      %14 = arith.addf %11, %13 : vector<8x384xf32>
      %cst_9 = arith.constant 2.000000e+01 : f32
      %15 = vector.broadcast %cst_9 : f32 to vector<8x384xf32>
      %16 = arith.minimumf %14, %15 : vector<8x384xf32>
      %17 = math.exp %16 : vector<8x384xf32>
      %cst_10 = arith.constant 2.000000e+00 : f32
      %18 = vector.broadcast %cst_10 : f32 to vector<8x384xf32>
      %19 = arith.addf %17, %18 : vector<8x384xf32>
      %20 = arith.mulf %17, %19 : vector<8x384xf32>
      %cst_11 = arith.constant 2.000000e+00 : f32
      %21 = vector.broadcast %cst_11 : f32 to vector<8x384xf32>
      %22 = arith.addf %20, %21 : vector<8x384xf32>
      %23 = arith.divf %20, %22 : vector<8x384xf32>
      %24 = arith.mulf %14, %23 : vector<8x384xf32>
      %c0_12 = arith.constant 0 : index
      %c0_13 = arith.constant 0 : index
      %25 = vector.load %arg6[%c0_12, %c0_13] : memref<8x384xf32, #tpu.memory_space<vmem>>, vector<8x384xf32>
      tpu.vector_store %arg6[%c0_12, %c0_13], %24 {strides = array<i32>} : memref<8x384xf32, #tpu.memory_space<vmem>>, vector<8x384xf32>,
    } else {
    }
    return
  }
  func.func @transform_0(%arg0: i32, %arg1: i32) -> (i32, i32) {
    %c0_i32 = arith.constant 0 : i32
    %c0_i32_0 = arith.constant 0 : i32
    return %c0_i32, %arg1 : i32, i32
  }
  func.func @transform_1(%arg0: i32, %arg1: i32) -> (i32, i32) {
    %c0_i32 = arith.constant 0 : i32
    %c0_i32_0 = arith.constant 0 : i32
    %c0_i32_1 = arith.constant 0 : i32
    return %c0_i32, %c0_i32_0 : i32, i32
  }
  func.func @transform_2(%arg0: i32, %arg1: i32) -> (i32, i32) {
    %c0_i32 = arith.constant 0 : i32
    %c0_i32_0 = arith.constant 0 : i32
    %c0_i32_1 = arith.constant 0 : i32
    return %c0_i32, %c0_i32_0 : i32, i32
  }
  func.func @transform_3(%arg0: i32, %arg1: i32) -> (i32, i32) {
    %c0_i32 = arith.constant 0 : i32
    %c0_i32_0 = arith.constant 0 : i32
    %c0_i32_1 = arith.constant 0 : i32
    return %c0_i32, %c0_i32_0 : i32, i32
  }
  func.func @transform_4(%arg0: i32, %arg1: i32) -> (i32, i32) {
    %c0_i32 = arith.constant 0 : i32
    %c0_i32_0 = arith.constant 0 : i32
    return %c0_i32, %arg1 : i32, i32
  }
}

</mosaic_0001>

<bundles_post_ra>
// kernel: tpu_custom_call.1
= control target key start
LH: loop header
LB: loop body
LE: loop exit
PB: predicated region body
PF: predicated region fallthrough
CT: control target
= control target key end

     0   :  { %9 = vsyncpa [#allocation7], 0  ;;  %s1124_s0 = inlined_call_operand.hbm [shape: f32[36,768], index: 0, kind: input, shape index: {}]   ;;  %s1125_s1 = inlined_call_operand.vmem [shape: f32[8,36], index: 1, kind: input, shape index: {}]   ;;  %s1126_s2 = inlined_call_operand.vmem [shape: f32[8,1], index: 2, kind: input, shape index: {}]   ;;  %s1127_s3 = inlined_call_operand.vmem [shape: f32[8,1], index: 3, kind: input, shape index: {}]   ;;  %s1128_s4 = inlined_call_operand.hbm [shape: f32[8,768], index: 4, kind: output, shape index: {}]  }
   0x1   :  { %11 = vsyncpa [#allocation7 + $0x1], 0 }
   0x2   :  { %12 = vsyncpa [#allocation8], 0 }
   0x3   :  { %14 = vsyncpa [#allocation8 + $0x1], 0  ;;  %s903_s15 = smov 0   ;;  %s905_s16 = smov 0  }
   0x4   :  { %s907_s17 = smov 0   ;;  %s909_s18 = smov 0  }
   0x5   :  { %s911_s19 = smov 0   ;;  %s913_s20 = smov 0  }
   0x6   :  { %s915_s21 = smov 0   ;;  %s917_s22 = smov 0  }
   0x7 LB: > { %s601_s23 = sadd.s32 4294967295, %s867_s22   ;;  %s602_s24 = sadd.s32 4294967294, %s867_s22   ;;  %s867_s22 = sphi %s917_s22, %s20_s22   ;;  %s863_s21 = sphi %s915_s21, %s1145_s21   ;;  %s859_s20 = sphi %s913_s20, %s1144_s20   ;;  %s855_s19 = sphi %s911_s19, %s1143_s19   ;;  %s851_s18 = sphi %s909_s18, %s1142_s18   ;;  %s847_s17 = sphi %s907_s17, %s1141_s17   ;;  %s843_s16 = sphi %s905_s16, %s1140_s16   ;;  %s839_s15 = sphi %s903_s15, %s1139_s15  }
   0x8   : > { %s29_s25 = sadd.s32 1, %s859_s20  ;;  %s32_s26 = sadd.s32 1, %s863_s21 }
   0x9   : > { %p30_p0 = scmp.ge.s32.totalorder %s29_s25, 2  ;;  %s39_s27 = sadd.s32 1, %s847_s17 }
   0xa   : > { %p46_p1 = scmp.ne.s32.totalorder %s847_s17, %s843_s16  ;;  %p47_p2 = scmp.eq.s32.totalorder %s867_s22, 0 }
   0xb   : > { %s1147_s25 = smov (%p30_p0, %s29_s25), 0  ;;  %s1149_s26 = smov (!%p30_p0, %s32_s26), %s863_s21 }
   0xc   : > { %1130 = sst [smem:[#allocation12_spill]] %s1147_s25  ;;  %s36_s28 = ssub.s32 %s859_s20, %s1147_s25 }
   0xd   : > { %p959_p3 = por %p47_p2, %p46_p1  ;;  %p34_p4 = scmp.ge.s32.totalorder %s1149_s26, 2 }
   0xe   : > { %p37_p5 = scmp.eq.s32.totalorder %s36_s28, 0  ;;  %p52_p6 = scmp.ne.s32.totalorder %s843_s16, %s839_s15 }
   0xf   : > { %p53_p7 = scmp.eq.s32.totalorder %s601_s23, 0  ;;  %s1151_s26 = smov (%p34_p4, %s1149_s26), 0 }
  0x10   : > { %1132 = sst [smem:[#allocation13_spill]] %s1151_s26  ;;  %p139_p9 = scmp.eq.s32.totalorder %s601_s23, 3 }
  0x11   : > { %s968_s30 = scalar_select %p37_p5, %s847_s17, %s39_s27  }
  0x12   : > { %p970_p8 = por %p53_p7, %p52_p6  ;;  %p145_p10 = scmp.eq.s32.totalorder %s602_s24, 3 }
  0x13   : > { %p977_p11 = por %p139_p9, %p46_p1  ;;  %p655_p12 = scmp.lt.s32.totalorder %s867_s22, 4 }
  0x14   : > { %p982_p13 = por %p145_p10, %p52_p6  ;;  %s174_s8 = sand.u32 1, %s847_s17  }
  0x15   : > { %s640_s9 = smul.u32 120, %s174_s8  ;;  %p990_p0 = pnand %p655_p12, %p959_p3 }
  0x16   : > { %s619_s10 = smul.u32 384, %s859_s20  ;;  %s175_s27 = scalar_lea.sflag [#allocation7], %s174_s8 }
  0x17   : > { %s178_s23 = scalar_lea.vmem [#allocation6], %s640_s9  ;;  %p745_p1 = pneg %p990_p0 }
  0x18   : > { %s184_s14 = scalar_lea.hbm %s1124_s0, %s619_s10  ;;  %s185_s24 = sshll.u32 %s178_s23, 4  ;;  %s186_s24 = int_to_ptr.vmem [resolvable:$true] %s185_s24 }
  0x19   : > { %s756_s28 = scalar_lea.vmem %s186_s24, 1920  ;;  %s869_s29 = smov [#allocation6]  }
  0x1a   : > { %p757_p2 = scmp.ne.s32.totalorder %s186_s24, %s756_s28  ;;  %s761_s26 = sshll.u32 %s869_s29, 4  ;;  %s762_s26 = int_to_ptr.vmem [resolvable:$false] %s761_s26 }
  0x1b   : > { %s763_s25 = scalar_lea.vmem %s762_s26, 3840  ;;  %p764_p3 = scmp.lt.s32.totalorder %s186_s24, %s762_s26 }
  0x1c   : > { %p759_p4 = pnand %p757_p2, %p745_p1  ;;  %p765_p6 = scmp.lt.s32.totalorder %s763_s25, %s756_s28 }
  0x1e   : > { %p760_p5 = pneg %p759_p4  ;;  %p766_p7 = por %p765_p6, %p764_p3 }
  0x20   : > { %p767_p9 = pnand %p766_p7, %p760_p5 }
  0x22   : > { %770 = shalt.err (!%p767_p9)
}
  0x23   : > { %s870_s10 = smov 768   ;;  %s871_s8 = smov 384  }
  0x24   : > { %s872_s9 = smov 24   ;;  %p606_p10 = scmp.ge.s32.totalorder %s867_s22, 1 }
  0x25   : > { %650 = dma.hbm_to_vmem [thread:$0]  (!%p990_p0), %s184_s14, 1920, %s186_s24, %s175_s27, %s870_s10, %s871_s8, %s872_s9  }
  0x26   : > { %p193_p12 = scmp.lt.s32.totalorder %s867_s22, 5 }
  0x28   : > { %p194_p1 = pnand %p606_p10, %p193_p12 }
  0x29   : > { %s1004_s12 = sand.u32 (!%p194_p1), 1, %s843_s16  }
  0x2a   : > { %197 = sbr.rel (%p194_p1) target bundleno = 655 (0x28f), region = 36  ;;  %s200_s26 = scalar_lea.sflag (!%p194_p1), [#allocation7], %s1004_s12 }
  0x2b   : > { %s641_s25 = smul.u32 (!%p194_p1), 120, %s1004_s12 }
  0x2d   : > { %s1008_s13 = scalar_lea.vmem (!%p194_p1), [#allocation6], %s641_s25 }
  0x2f   : > { %830 = dma.done.wait (%p970_p8), %s200_s26, 1920  }
  0x30   : > { %832 = vsyncadd (%p970_p8), %s200_s26, 4294965376  ;;  %s642_s11 = smul.u32 24, %s1004_s12  ;;  %v873_v0 = vmov 0.0   ;;  %vm874_vm0 = vmmov 0   ;;  %vm250_vm1 = vcmask 1043456   ;;  %v241_v4 = vld [vmem:[%s1008_s13 + $0x50] sm:$0xff] }
  0x31   : > { %627 = vmatprep.subr.mxu1 %v873_v0  ;;  %637 = vmatprep.mubr.msk.f32.mxu1 %vm874_vm0, %v873_v0  ;;  %v244_v1 = vld [vmem:[%s1008_s13 + $0x68] sm:$0xf]  ;;  %v245_v2 = vld [vmem:[%s1008_s13 + $0x70] sm:$0xf]  ;;  %v243_v3 = vld [vmem:[%s1008_s13 + $0x60] sm:$0xf] }
  0x32   : > { %324 = vmatprep.mubr.f32.mxu0 %v873_v0  ;;  %607 = vmatprep.subr.msk.mxu0 %vm250_vm1, %v244_v1  ;;  %v242_v5 = vld [vmem:[%s1008_s13 + $0x58] sm:$0xff]  ;;  %v240_v6 = vld [vmem:[%s1008_s13 + $0x48] sm:$0xff]  ;;  %v239_v8 = vld [vmem:[%s1008_s13 + $0x40] sm:$0xff]  ;;  %vm246_vm2 = vcmask 293888   ;;  %s1041_s23 = scalar_lea.vmem [#allocation9], %s642_s11  ;;  %p612_p8 = scmp.ne.s32.totalorder %s855_s19, 0 }
  0x33   : > { %628 = vmatpush3.msk.msra.mxu1 %vm250_vm1, %v245_v2  ;;  %608 = vmatpush1.msk.msra.mxu0 %vm250_vm1, %v243_v3  ;;  %v238_v7 = vld [vmem:[%s1008_s13 + $0x38] sm:$0xff]  ;;  %v237_v9 = vld [vmem:[%s1008_s13 + $0x30] sm:$0xff]  ;;  %v235_v10 = vld [vmem:[%s1008_s13 + $0x20] sm:$0xff]  ;;  %p613_p0 = scmp.ne.s32.totalorder (!%p612_p8), %s851_s18, 0 }
  0x34   : > { %629 = vmatprep.subr.mxu1 %v873_v0  ;;  %284 = vmatprep.subr.mxu0 %v241_v4  ;;  %v236_v11 = vld [vmem:[%s1008_s13 + $0x28] sm:$0xff]  ;;  %v234_v12 = vld [vmem:[%s1008_s13 + $0x18] sm:$0xff]  ;;  %v233_v14 = vld [vmem:[%s1008_s13 + $0x10] sm:$0xff] }
  0x35   : > { %630 = vmatpush3.msra.mxu1 %v242_v5  ;;  %285 = vmatpush1.msra.mxu0 %v240_v6  ;;  %v232_v13 = vld [vmem:[%s1008_s13 + $0x8] sm:$0xff]  ;;  %v231_v15 = vld [vmem:[%s1008_s13] sm:$0xff] }
  0x36   : > { %631 = vmatprep.subr.mxu1 %v873_v0  ;;  %286 = vmatprep.subr.mxu0 %v238_v7  ;;  %v230_v16 = vld [vmem:[%s1125_s1] sm:$0xff] }
  0x37   : > { %632 = vmatpush3.msra.mxu1 %v239_v8  ;;  %287 = vmatpush1.msra.mxu0 %v237_v9 }
  0x38   : > { %633 = vmatprep.subr.mxu1 %v873_v0  ;;  %288 = vmatprep.subr.mxu0 %v235_v10 }
  0x39   : > { %634 = vmatpush3.msra.mxu1 %v236_v11  ;;  %289 = vmatpush1.msra.mxu0 %v234_v12 }
  0x3a   : > { %635 = vmatprep.subr.mxu1 %v873_v0  ;;  %290 = vmatprep.subr.mxu0 %v232_v13 }
  0x3b   : > { %636 = vmatpush3.msra.mxu1 %v233_v14  ;;  %291 = vmatpush1.msra.mxu0 %v231_v15 }
  0x3c   : > { %638 = vmatmul.mubr.msk.f32.vlgmr.msra.gmra.mxu1 %vm246_vm2, %v230_v16  ;;  %609 = vmatmul.mubr.msk.f32.vlgmr.msra.gmra.mxu0 %vm246_vm2, %v230_v16 }
  0xfa   : > { %404 = sbr.rel (%p612_p8) target bundleno = 447 (0x1bf), region = 44 }
  0xfc   : > { %v1033_v17 = vpop.f32.mrf.mxu1  ;;  %v1035_v18 = vpop.f32.mrf.mxu0 }
  0xfe   : > { %v639_v19 = vpop.f32.mrf.mxu1  ;;  %v1037_v20 = vpop.f32.mrf.mxu0 }
  0xff   : > { %408 = sbr.rel (%p613_p0) target bundleno = 262 (0x106), region = 48 }
 0x104   : > { %vm409_vm3 = vcmask 7168   ;;  %v875_v21 = vmov 0.0  }
 0x105   : > { %410 = vst.msk [vmem:[#allocation2] sm:$0xff] %vm409_vm3, %v875_v21  ;;  %411 = vst.msk [vmem:[#allocation3] sm:$0xff] %vm409_vm3, %v875_v21 }
 0x106 PF: > { %v413_v22 = vadd.f32 %v1037_v20, %v1035_v18  ;;  %v421_v23 = vmul.f32 %v1035_v18, %v1035_v18  ;;  %v422_v24 = vmul.f32 %v1037_v20, %v1037_v20  ;;  %v423_v25 = vmul.f32 %v1033_v17, %v1033_v17  ;;  %430 = vst [vmem:[%s1041_s23] sm:$0xff] %v1035_v18  ;;  %p614_p2 = scmp.ne.s32.totalorder %s851_s18, 1 }
 0x107   : > { %431 = vst [vmem:[%s1041_s23 + $0x8] sm:$0xff] %v1037_v20  ;;  %432 = vst [vmem:[%s1041_s23 + $0x10] sm:$0xff] %v1033_v17  ;;  %vm418_vm4 = vcmask 7168  }
 0x108   : > { %v414_v26 = vadd.f32 %v413_v22, %v1033_v17  ;;  %v424_v27 = vadd.f32 %v422_v24, %v421_v23 }
 0x10a   : > { %415 = vadd.xlane.f32.xlu0 %v414_v26  ;;  %v425_v28 = vadd.f32 %v424_v27, %v423_v25 }
 0x10c   : > { %v412_v29 = vld [vmem:[#allocation2] sm:$0xff]  ;;  %v420_v32 = vld [vmem:[#allocation3] sm:$0xff] }
 0x10e   : > { %426 = vadd.xlane.f32.xlu0 %v425_v28 }
 0x193   : > { %v416_v30 = vpop.xlane.xlu0 %415 }
 0x194   : > { %v417_v31 = vadd.f32 %v416_v30, %v412_v29 }
 0x196   : > { %419 = vst.msk [vmem:[#allocation2] sm:$0xff] %vm418_vm4, %v417_v31  ;;  %436 = sbr.rel (%p614_p2) target bundleno = 447 (0x1bf), region = 52 }
 0x197   : > { %v427_v33 = vpop.xlane.xlu0 %426 }
 0x198   : > { %v428_v34 = vadd.f32 %v427_v33, %v420_v32 }
 0x19a   : > { %429 = vst.msk [vmem:[#allocation3] sm:$0xff] %vm418_vm4, %v428_v34 }
 0x19b   : > { %v446_v43 = vld [vmem:[%s1126_s2] sm:$0xff] }
 0x19c   : > { %v449_v46 = vld [vmem:[%s1127_s3] sm:$0xff] }
 0x19d   : > { %v437_v35 = vld [vmem:[#allocation2] sm:$0xff] }
 0x19e   : > { %v438_v37 = vmul.f32 0.001953125, %v437_v35 }
 0x1a0   : > { %v441_v39 = vmul.f32 %v438_v37, %v438_v37 }
 0x1a1   : > { %v439_v36 = vld [vmem:[#allocation3] sm:$0xff] }
 0x1a2   : > { %v440_v38 = vmul.f32 0.001953125, %v439_v36 }
 0x1a4   : > { %v442_v40 = vsub.f32 %v440_v38, %v441_v39 }
 0x1a6   : > { %v443_v41 = vmax.f32 %v442_v40, 0.0 }
 0x1a8   : > { %v444_v42 = vadd.f32 1e-05, %v443_v41 }
 0x1aa   : > { %728 = vrsqrt.f32 %v444_v42 }
 0x1b7   : > { %v729_v44 = vpop.eup %728 }
 0x1b8   : > { %v447_v45 = vmul.f32 %v729_v44, %v446_v43 }
 0x1ba   : > { %448 = vst.msk [vmem:[#allocation4] sm:$0xff] %vm418_vm4, %v447_v45  ;;  %v450_v47 = vmul.f32 %v447_v45, %v438_v37 }
 0x1bc   : > { %v451_v48 = vsub.f32 %v449_v46, %v450_v47 }
 0x1be   : > { %452 = vst.msk [vmem:[#allocation5] sm:$0xff] %vm418_vm4, %v451_v48 }
 0x1bf PF: > { %p615_p4 = scmp.ne.s32.totalorder %s855_s19, 1 }
 0x1c1   : > { %456 = sbr.rel (%p615_p4) target bundleno = 631 (0x277), region = 56 }
 0x1c6   : > { %v457_v49 = vld [vmem:[#allocation4] sm:$0xff]  ;;  %v876_v50 = vmov 0   ;;  %v466_v51 = vld [vmem:[#allocation5] sm:$0xff] }
 0x1c7   : > { %730 = vset.pattern.permute.xlu0 %v876_v50 }
 0x1c8   : > { %460 = vperm.xlu0 %730, %v457_v49  }
 0x1cc   : > { %469 = vperm.xlu0 %730, %v466_v51  }
 0x243   : > { %v461_v52 = vpop.permute.xlu0 %460 }
 0x244   : > { %v463_v53 = vmul.f32 %v461_v52, %v1035_v18  ;;  %v464_v54 = vmul.f32 %v461_v52, %v1037_v20  ;;  %v465_v55 = vmul.f32 %v461_v52, %v1033_v17 }
 0x247   : > { %v470_v56 = vpop.permute.xlu0 %469 }
 0x248   : > { %v472_v57 = vadd.f32 %v470_v56, %v463_v53  ;;  %v473_v58 = vadd.f32 %v470_v56, %v464_v54  ;;  %v474_v59 = vadd.f32 %v470_v56, %v465_v55 }
 0x24a   : > { %v475_v60 = vmin.f32 %v472_v57, 20.0  ;;  %v476_v61 = vmin.f32 %v473_v58, 20.0  ;;  %v477_v62 = vmin.f32 %v474_v59, 20.0 }
 0x24c   : > { %v478_v63 = vmul.f32 1.442695, %v475_v60  ;;  %v480_v0 = vmul.f32 1.442695, %v476_v61  ;;  %v482_v1 = vmul.f32 1.442695, %v477_v62 }
 0x24e   : > { %731 = vpow2.f32 %v478_v63 }
 0x24f   : > { %733 = vpow2.f32 %v480_v0 }
 0x250   : > { %735 = vpow2.f32 %v482_v1 }
 0x25b   : > { %v732_v2 = vpop.eup %731 }
 0x25c   : > { %v734_v3 = vpop.eup %733  ;;  %v484_v4 = vadd.f32 2.0, %v732_v2 }
 0x25d   : > { %v736_v5 = vpop.eup %735  ;;  %v485_v6 = vadd.f32 2.0, %v734_v3 }
 0x25e   : > { %v486_v7 = vadd.f32 2.0, %v736_v5  ;;  %v487_v8 = vmul.f32 %v732_v2, %v484_v4 }
 0x25f   : > { %v488_v9 = vmul.f32 %v734_v3, %v485_v6 }
 0x260   : > { %v489_v10 = vmul.f32 %v736_v5, %v486_v7  ;;  %v490_v11 = vadd.f32 2.0, %v487_v8 }
 0x261   : > { %v491_v12 = vadd.f32 2.0, %v488_v9 }
 0x262   : > { %v492_v13 = vadd.f32 2.0, %v489_v10  ;;  %737 = vrcp.f32 %v490_v11 }
 0x263   : > { %739 = vrcp.f32 %v491_v12 }
 0x264   : > { %741 = vrcp.f32 %v492_v13 }
 0x26f   : > { %v738_v14 = vpop.eup %737 }
 0x270   : > { %v740_v15 = vpop.eup %739  ;;  %v494_v16 = vmul.f32 %v738_v14, %v487_v8 }
 0x271   : > { %v742_v17 = vpop.eup %741  ;;  %v496_v18 = vmul.f32 %v740_v15, %v488_v9 }
 0x272   : > { %v498_v19 = vmul.f32 %v742_v17, %v489_v10  ;;  %v499_v20 = vmul.f32 %v494_v16, %v472_v57 }
 0x273   : > { %v500_v21 = vmul.f32 %v496_v18, %v473_v58 }
 0x274   : > { %v501_v22 = vmul.f32 %v498_v19, %v474_v59  ;;  %502 = vst [vmem:[%s1041_s23] sm:$0xff] %v499_v20 }
 0x275   : > { %503 = vst [vmem:[%s1041_s23 + $0x8] sm:$0xff] %v500_v21 }
 0x276   : > { %504 = vst [vmem:[%s1041_s23 + $0x10] sm:$0xff] %v501_v22 }
 0x277 PF: > { %s620_s19 = smul.u32 384, %s851_s18  ;;  %s520_s10 = sshll.u32 %s1041_s23, 4  ;;  %s521_s10 = int_to_ptr.vmem [resolvable:$true] %s520_s10 }
 0x278   : > { %s506_s26 = scalar_lea.sflag [#allocation8], %s1004_s12  ;;  %s771_s13 = scalar_lea.vmem %s521_s10, 384 }
 0x279   : > { %s518_s25 = scalar_lea.hbm %s1128_s4, %s620_s19  ;;  %p772_p5 = scmp.ne.s32.totalorder %s521_s10, %s771_s13 }
 0x27a   : > { %s877_s11 = smov [#allocation9]  }
 0x27b   : > { %p773_p3 = pnand %p772_p5, %p977_p11  ;;  %s775_s5 = sshll.u32 %s877_s11, 4  ;;  %s776_s5 = int_to_ptr.vmem [resolvable:$false] %s775_s5 }
 0x27c   : > { %s777_s14 = scalar_lea.vmem %s776_s5, 768  ;;  %p778_p7 = scmp.lt.s32.totalorder %s521_s10, %s776_s5 }
 0x27d   : > { %p774_p6 = pneg %p773_p3  ;;  %p779_p9 = scmp.lt.s32.totalorder %s777_s14, %s771_s13 }
 0x27f   : > { %p780_p10 = por %p779_p9, %p778_p7 }
 0x281   : > { %p781_p12 = pnand %p780_p10, %p774_p6 }
 0x283   : > { %784 = shalt.err (!%p781_p12)
}
 0x284   : > { %s785_s18 = scalar_lea.hbm %s518_s25, 384  ;;  %s789_s24 = scalar_lea.hbm %s1128_s4, 768 }
 0x285   : > { %p786_p1 = scmp.ne.s32.totalorder %s518_s25, %s785_s18  ;;  %p790_p2 = scmp.lt.s32.totalorder %s518_s25, %s1128_s4 }
 0x286   : > { %p791_p4 = scmp.lt.s32.totalorder %s789_s24, %s785_s18 }
 0x287   : > { %p787_p8 = pnand %p786_p1, %p977_p11 }
 0x288   : > { %p792_p5 = por %p791_p4, %p790_p2 }
 0x289   : > { %p788_p0 = pneg %p787_p8 }
 0x28b   : > { %p793_p3 = pnand %p792_p5, %p788_p0 }
 0x28d   : > { %796 = shalt.err (!%p793_p3)
}
 0x28e   : > { %645 = dma.vmem_to_hbm [thread:$0]  (%p977_p11), %s521_s10, 384, %s518_s25, %s506_s26  }
 0x28f PF: > { %p656_p6 = scmp.ge.s32.totalorder %s867_s22, 2  ;;  %s532_s29 = sand.u32 1, %s839_s15  }
 0x290   : > { %s533_s19 = scalar_lea.sflag [#allocation8], %s532_s29 }
 0x291   : > { %p652_p7 = pnand %p656_p6, %p982_p13 }
 0x293   : > { %p653_p9 = pneg %p652_p7 }
 0x295   : > { %834 = dma.done.wait (%p653_p9), %s533_s19, 384  }
 0x296   : > { %836 = vsyncadd (%p653_p9), %s533_s19, 4294966912  ;;  %s20_s22 = sadd.s32 1, %s867_s22   ;;  %s1137_s6 = sld [smem:[#allocation12_spill]] }
 0x297   : > { %p17_p10 = scmp.ge.s32.totalorder %s20_s22, 6   ;;  %s1138_s10 = sld [smem:[#allocation13_spill]] }
 0x298   : > { %s1139_s15 = smov %s843_s16  ;;  %s1140_s16 = smov %s847_s17 }
 0x299   : > { %s1141_s17 = smov %s968_s30  ;;  %s1142_s18 = smov %s859_s20 }
 0x29a   : > { %s1143_s19 = smov %s863_s21  ;;  %19 = sbr.rel (!%p17_p10) target bundleno = 7 (0x7), region = 97 }
 0x29c   : > { %s1144_s20 = smov %s1137_s6 }
 0x29d   : > { %s1145_s21 = smov %s1138_s10 }
 0x29f   :  { %538 = vsyncpa [#allocation7], 1 }
 0x2a0   :  { %540 = vsyncpa [#allocation7 + $0x1], 1 }
 0x2a1   :  { %541 = vsyncpa [#allocation8], 1 }
 0x2a2   :  { %543 = vsyncpa [#allocation8 + $0x1], 1 }

</bundles_post_ra>
